<compile_context>
chip_gen: v7x
topology: tpu7x:2x2x1
jax: 0.10.0
libtpu: 0.0.40
codegen_flags: <defaults>
</compile_context>

<pallas_src>
import functools

import numpy as np
import jax
import jax.numpy as jnp
from jax.experimental import pallas as pl
from jax.experimental.pallas import tpu as pltpu

_PAD_SENTINEL = 1e30                       # sorts after every real distance
_VMEM_BUDGET = 20 * 1024 * 1024            # double-buffered per-step budget
_VMEM_LIMIT = 48 * 1024 * 1024             # explicit scoped-VMEM limit


def _round_up(v: int, m: int) -> int:
    return ((v + m - 1) // m) * m


# ---------------------------------------------------------------------------
# Kernel 1 (fused): projection + both pairwise squared-distance matrices,
# (TM, TN)-tiled over the (Nx, Ny) output.  W/b are grid-resident.
# ---------------------------------------------------------------------------
def _dists_kernel(x_ref, y_ref, w_ref, b_ref, da_ref, db_ref,
                  *, nx, ny, tm, tn, mask):
    x = x_ref[...]          # (TM, Fp)
    y = y_ref[...]          # (TN, Fp)
    w = w_ref[...]          # (Fp, Dpp)
    b = b_ref[...]          # (1, Dpp)

    # Fused projection: free MXU filler on an HBM-bound pass.
    px = jnp.dot(x, w, preferred_element_type=jnp.float32) + b   # (TM, Dpp)
    py = jnp.dot(y, w, preferred_element_type=jnp.float32) + b   # (TN, Dpp)

    def sqdist(a, c):
        # alibi_detect squared_pairwise_distance (clamp_min 1e-30)
        a2 = jnp.sum(a * a, axis=-1, keepdims=True)               # (TM, 1)
        c2 = jnp.sum(c * c, axis=-1, keepdims=True)               # (TN, 1)
        ac = jnp.dot(a, c.T, preferred_element_type=jnp.float32)  # MXU
        return jnp.maximum(a2 + c2.T - 2.0 * ac, 1e-30)

    da = sqdist(px, py)     # projected space (kernel_a)
    db = sqdist(x, y)       # raw space       (kernel_b)

    if mask:
        rows = pl.program_id(0) * tm + jax.lax.broadcasted_iota(
            jnp.int32, (tm, tn), 0)
        cols = pl.program_id(1) * tn + jax.lax.broadcasted_iota(
            jnp.int32, (tm, tn), 1)
        valid = (rows < nx) & (cols < ny)
        da = jnp.where(valid, da, _PAD_SENTINEL)
        db = jnp.where(valid, db, _PAD_SENTINEL)

    da_ref[...] = da
    db_ref[...] = db


# ---------------------------------------------------------------------------
# Kernel 2: elementwise RBF exponentials + eps-weighted mix (output aliased
# onto the `da` buffer).
# ---------------------------------------------------------------------------
def _combine_kernel(params_ref, da_ref, db_ref, o_ref):
    # params (SMEM f32[3]) = [gamma_a, gamma_b, eps]
    gamma_a = params_ref[0]
    gamma_b = params_ref[1]
    eps = params_ref[2]
    ka = jnp.exp(-gamma_a * da_ref[...])   # EUP slot
    kb = jnp.exp(-gamma_b * db_ref[...])
    o_ref[...] = (1.0 - eps) * ka + eps * kb


# ---------------------------------------------------------------------------
# Median heuristic (Gretton 2012) on a (possibly sentinel-padded) distance
# matrix.  `total`/`n` are Python ints, `same` is a traced bool or None.
# ---------------------------------------------------------------------------
def _median_sigma(dist_padded, total, n, same):
    med_diff = total // 2 - 1                      # Python-int arithmetic:
    if same is None:                               # no int32 overflow.
        n_median = med_diff
    else:
        med_same = n + (total - n) // 2 - 1
        n_median = jnp.where(same, med_same, med_diff)
    # TODO(synk): at large N an exact k-th order-statistic selection (e.g. a
    # per-tile histogram emitted by the dists kernel + a small refinement
    # pass) would avoid this O(N^2 log N^2) sort; kept exact here.
    sorted_d = jnp.sort(dist_padded.reshape(-1))
    return jnp.sqrt(0.5 * sorted_d[n_median])


# ---------------------------------------------------------------------------
# Tile selection (lane-dense TN, sublane-aligned TM, >=2 i-tiles when
# possible for v7x dual-TC sharding, bounded double-buffered VMEM).
# ---------------------------------------------------------------------------
def _pick_tiles(nx, ny, f_p, dp_p, tm_max, tn_max):
    nx8 = _round_up(nx, 8)
    if nx8 < 16:
        tm = nx8
    elif nx8 <= tm_max:
        tm = _round_up((nx8 + 1) // 2, 8)     # split so >=2 i-tiles exist
    else:
        tm = tm_max
    tn = min(tn_max, _round_up(max(ny, 128), 128))

    def vmem_bytes(tm, tn):
        per_step = 4 * (tm * f_p + tn * f_p + f_p * dp_p + dp_p + 2 * tm * tn)
        return 2 * per_step                    # double buffering

    while vmem_bytes(tm, tn) > _VMEM_BUDGET:
        if tn > 128 and tn >= tm:
            tn = _round_up(tn // 2, 128)
        elif tm > 8:
            tm = _round_up(tm // 2, 8)
        elif tn > 128:
            tn = _round_up(tn // 2, 128)
        else:
            break
    return tm, tn


# ---------------------------------------------------------------------------
# Forward pass.
# ---------------------------------------------------------------------------
def deep_kernel_forward(x, y, w, b, logit_eps, *, tm=1024, tn=512):
    Nx, F = x.shape
    Ny = y.shape[0]
    Dp = w.shape[1]

    F_p = _round_up(F, 128)    # MXU-friendly contraction dim (zero-padded)
    Dp_p = _round_up(Dp, 128)  # MXU-friendly projection width (zero-padded)
    TM, TN = _pick_tiles(Nx, Ny, F_p, Dp_p, tm, tn)
    Nx_p = _round_up(Nx, TM)
    Ny_p = _round_up(Ny, TN)

    f32 = jnp.float32
    xp = jnp.zeros((Nx_p, F_p), f32).at[:Nx, :F].set(x.astype(f32))
    yp = jnp.zeros((Ny_p, F_p), f32).at[:Ny, :F].set(y.astype(f32))
    wp = jnp.zeros((F_p, Dp_p), f32).at[:F, :Dp].set(w.astype(f32))
    bp = jnp.zeros((1, Dp_p), f32).at[:, :Dp].set(b.astype(f32))

    # 1) fused projection + tiled pairwise distance matrices.
    grid = (Nx_p // TM, Ny_p // TN)
    need_mask = (Nx_p != Nx) or (Ny_p != Ny)
    dists_kernel = functools.partial(
        _dists_kernel, nx=Nx, ny=Ny, tm=TM, tn=TN, mask=need_mask)

    da, db = pl.pallas_call(
        dists_kernel,
        grid=grid,
        out_shape=(
            jax.ShapeDtypeStruct((Nx_p, Ny_p), f32),
            jax.ShapeDtypeStruct((Nx_p, Ny_p), f32),
        ),
        in_specs=[
            pl.BlockSpec((TM, F_p), lambda i, j: (i, 0)),
            pl.BlockSpec((TN, F_p), lambda i, j: (j, 0)),
            pl.BlockSpec((F_p, Dp_p), lambda i, j: (0, 0)),
            pl.BlockSpec((1, Dp_p), lambda i, j: (0, 0)),
        ],
        out_specs=(
            pl.BlockSpec((TM, TN), lambda i, j: (i, j)),
            pl.BlockSpec((TM, TN), lambda i, j: (i, j)),
        ),
        compiler_params=pltpu.CompilerParams(
            dimension_semantics=("parallel", "parallel"),
            vmem_limit_bytes=_VMEM_LIMIT),
    )(xp, yp, wp, bp)

    # 2) GaussianRBF(sigma=None): infer sigma via the median heuristic.
    #    kernel_a's "same" check is on the projected inputs (exact PyTorch
    #    semantics); it only needs the first min(Nx,Ny) rows, so it is cheap.
    total = Nx * Ny
    n = min(Nx, Ny)
    if x.shape == y.shape:
        same_b = jnp.all(x[:n] == y[:n])
        px_n = x[:n].astype(f32) @ w.astype(f32) + b.astype(f32)
        py_n = y[:n].astype(f32) @ w.astype(f32) + b.astype(f32)
        same_a = jnp.all(px_n == py_n)
    else:
        same_a = None
        same_b = None
    sigma_a = _median_sigma(da, total, n, same_a)
    sigma_b = _median_sigma(db, total, n, same_b)
    gamma_a = 1.0 / (2.0 * sigma_a ** 2)
    gamma_b = 1.0 / (2.0 * sigma_b ** 2)
    eps = jax.nn.sigmoid(logit_eps)
    params = jnp.stack([gamma_a, gamma_b, eps]).astype(f32)

    # 3) tiled elementwise combine (mem-bound; exp goes to the EUP slot).
    #    Output aliased onto `da` so only two N^2 f32 buffers stay live.
    out_p = pl.pallas_call(
        _combine_kernel,
        grid=grid,
        out_shape=jax.ShapeDtypeStruct((Nx_p, Ny_p), f32),
        in_specs=[
            pl.BlockSpec(memory_space=pltpu.MemorySpace.SMEM),  # [ga, gb, eps]
            pl.BlockSpec((TM, TN), lambda i, j: (i, j)),
            pl.BlockSpec((TM, TN), lambda i, j: (i, j)),
        ],
        out_specs=pl.BlockSpec((TM, TN), lambda i, j: (i, j)),
        input_output_aliases={1: 0},
        compiler_params=pltpu.CompilerParams(
            dimension_semantics=("parallel", "parallel"),
            vmem_limit_bytes=_VMEM_LIMIT),
    )(params, da, db)

    return out_p[:Nx, :Ny]


# ---------------------------------------------------------------------------
# Plain-JAX reference of the same forward pass (correctness check).
# ---------------------------------------------------------------------------
def _sigma_median_ref(x, y, dist):
    n = min(x.shape[0], y.shape[0])
    if x.shape == y.shape:
        same = jnp.all(x[:n] == y[:n])
    else:
        same = jnp.bool_(False)
    n_eff = jnp.where(same, n, 0)
    total = dist.shape[0] * dist.shape[1]
    n_median = n_eff + (total - n_eff) // 2 - 1
    return jnp.sqrt(0.5 * jnp.sort(dist.reshape(-1))[n_median])


def _reference(x, y, w, b, logit_eps):
    px = x @ w + b
    py = y @ w + b

    def sqd(a, c):
        return jnp.maximum(jnp.sum(a * a, -1)[:, None]
                           + jnp.sum(c * c, -1)[None, :] - 2.0 * a @ c.T,
                           1e-30)

    da = sqd(px, py)
    db = sqd(x, y)
    sa = _sigma_median_ref(px, py, da)   # kernel_a sees projected inputs
    sb = _sigma_median_ref(x, y, db)
    ga = 1.0 / (2.0 * sa ** 2)
    gb = 1.0 / (2.0 * sb ** 2)
    eps = jax.nn.sigmoid(logit_eps)
    return (1.0 - eps) * jnp.exp(-ga * da) + eps * jnp.exp(-gb * db)


if __name__ == "__main__":
    key = jax.random.PRNGKey(0)
    kx, ky, kw, kb = jax.random.split(key, 4)

    Nx, Ny, F, Dp = 8, 8, 32, 16
    x = jax.random.normal(kx, (Nx, F), dtype=jnp.float32)
    y = jax.random.normal(ky, (Ny, F), dtype=jnp.float32)

    # deterministic synthetic projection parameters (proj = Linear(F -> Dp))
    # TODO(synk): an arbitrary nn.Module `proj` is modeled here as one Linear.
    w = jax.random.normal(kw, (F, Dp), dtype=jnp.float32) * (1.0 / np.sqrt(F))
    b = jax.random.normal(kb, (1, Dp), dtype=jnp.float32) * 0.01
    logit_eps = jnp.float32(0.0)  # eps='trainable' default -> eps=0.5

    forward = jax.jit(deep_kernel_forward, static_argnames=("tm", "tn"))

    # case 1: x != y
    out = jax.block_until_ready(forward(x, y, w, b, logit_eps))
    ref = _reference(x, y, w, b, logit_eps)
    np.testing.assert_allclose(np.asarray(out), np.asarray(ref),
                               rtol=1e-5, atol=1e-5)
    assert out.shape == (Nx, Ny)

    # case 2: x == y (exercises the median-heuristic `same` branch)
    out2 = jax.block_until_ready(forward(x, x, w, b, logit_eps))
    ref2 = _reference(x, x, w, b, logit_eps)
    np.testing.assert_allclose(np.asarray(out2), np.asarray(ref2),
                               rtol=1e-5, atol=1e-5)

    # case 3: multi-tile grid (>=2 i-tiles) + masked padding, Nx != Ny
    N2x, N2y, F2, D2 = 160, 200, 48, 24
    k2x, k2y, k2w, k2b = jax.random.split(jax.random.PRNGKey(1), 4)
    x2 = jax.random.normal(k2x, (N2x, F2), dtype=jnp.float32)
    y2 = jax.random.normal(k2y, (N2y, F2), dtype=jnp.float32)
    w2 = jax.random.normal(k2w, (F2, D2), dtype=jnp.float32) * (1.0 / np.sqrt(F2))
    b2 = jax.random.normal(k2b, (1, D2), dtype=jnp.float32) * 0.01
    out3 = jax.block_until_ready(forward(x2, y2, w2, b2, logit_eps))
    ref3 = _reference(x2, y2, w2, b2, logit_eps)
    np.testing.assert_allclose(np.asarray(out3), np.asarray(ref3),
                               rtol=1e-4, atol=1e-4)
    assert out3.shape == (N2x, N2y)

    print("KERNEL_OK")
</pallas_src>

<mosaic_0001>
module attributes {stable_mosaic.version = 11 : i64} {
  func.func @_combine_kernel(%arg0: i32, %arg1: i32, %arg2: memref<3xf32, #tpu.memory_space<smem>>, %arg3: memref<8x128xf32, #tpu.memory_space<vmem>>, %arg4: memref<8x128xf32, #tpu.memory_space<vmem>>, %arg5: memref<8x128xf32, #tpu.memory_space<vmem>>) attributes {dimension_semantics = [#tpu.dimension_semantics<parallel>, #tpu.dimension_semantics<parallel>], iteration_bounds = array<i64: 1, 1>, scalar_prefetch = 0 : i64, scratch_operands = 0 : i64, tpu.core_type = #tpu.core_type<tc>, window_params = [{transform_indices = @transform_0, window_bounds = array<i64: 3>}, {transform_indices = @transform_1, window_bounds = array<i64: 8, 128>}, {transform_indices = @transform_2, window_bounds = array<i64: 8, 128>}, {transform_indices = @transform_3, window_bounds = array<i64: 8, 128>}]} {
    %c0 = arith.constant 0 : index
    %0 = memref.load %arg2[%c0] : memref<3xf32, #tpu.memory_space<smem>>
    %c1 = arith.constant 1 : index
    %1 = memref.load %arg2[%c1] : memref<3xf32, #tpu.memory_space<smem>>
    %c2 = arith.constant 2 : index
    %2 = memref.load %arg2[%c2] : memref<3xf32, #tpu.memory_space<smem>>
    %cst = arith.constant 0.000000e+00 : f32
    %3 = arith.subf %cst, %0 : f32
    %c0_0 = arith.constant 0 : index
    %c0_1 = arith.constant 0 : index
    %4 = vector.load %arg3[%c0_0, %c0_1] : memref<8x128xf32, #tpu.memory_space<vmem>>, vector<8x128xf32>
    %5 = vector.broadcast %3 : f32 to vector<8x128xf32>
    %6 = arith.mulf %5, %4 : vector<8x128xf32>
    %7 = math.exp %6 : vector<8x128xf32>
    %cst_2 = arith.constant 0.000000e+00 : f32
    %8 = arith.subf %cst_2, %1 : f32
    %c0_3 = arith.constant 0 : index
    %c0_4 = arith.constant 0 : index
    %9 = vector.load %arg4[%c0_3, %c0_4] : memref<8x128xf32, #tpu.memory_space<vmem>>, vector<8x128xf32>
    %10 = vector.broadcast %8 : f32 to vector<8x128xf32>
    %11 = arith.mulf %10, %9 : vector<8x128xf32>
    %12 = math.exp %11 : vector<8x128xf32>
    %cst_5 = arith.constant 1.000000e+00 : f32
    %13 = arith.subf %cst_5, %2 : f32
    %14 = vector.broadcast %13 : f32 to vector<8x128xf32>
    %15 = arith.mulf %14, %7 : vector<8x128xf32>
    %16 = vector.broadcast %2 : f32 to vector<8x128xf32>
    %17 = arith.mulf %16, %12 : vector<8x128xf32>
    %18 = arith.addf %15, %17 : vector<8x128xf32>
    %c0_6 = arith.constant 0 : index
    %c0_7 = arith.constant 0 : index
    %19 = vector.load %arg5[%c0_6, %c0_7] : memref<8x128xf32, #tpu.memory_space<vmem>>, vector<8x128xf32>
    tpu.vector_store %arg5[%c0_6, %c0_7], %18 {strides = array<i32>} : memref<8x128xf32, #tpu.memory_space<vmem>>, vector<8x128xf32>,
    return
  }
  func.func @transform_0(%arg0: i32, %arg1: i32) -> i32 {
    %c0_i32 = arith.constant 0 : i32
    %c0_i32_0 = arith.constant 0 : i32
    return %c0_i32 : i32
  }
  func.func @transform_1(%arg0: i32, %arg1: i32) -> (i32, i32) {
    %c0_i32 = arith.constant 0 : i32
    return %arg0, %arg1 : i32, i32
  }
  func.func @transform_2(%arg0: i32, %arg1: i32) -> (i32, i32) {
    %c0_i32 = arith.constant 0 : i32
    return %arg0, %arg1 : i32, i32
  }
  func.func @transform_3(%arg0: i32, %arg1: i32) -> (i32, i32) {
    %c0_i32 = arith.constant 0 : i32
    return %arg0, %arg1 : i32, i32
  }
}

module attributes {stable_mosaic.version = 11 : i64} {
  func.func @_dists_kernel(%arg0: i32, %arg1: i32, %arg2: memref<8x128xf32, #tpu.memory_space<vmem>>, %arg3: memref<128x128xf32, #tpu.memory_space<vmem>>, %arg4: memref<128x128xf32, #tpu.memory_space<vmem>>, %arg5: memref<1x128xf32, #tpu.memory_space<vmem>>, %arg6: memref<8x128xf32, #tpu.memory_space<vmem>>, %arg7: memref<8x128xf32, #tpu.memory_space<vmem>>) attributes {dimension_semantics = [#tpu.dimension_semantics<parallel>, #tpu.dimension_semantics<parallel>], iteration_bounds = array<i64: 1, 1>, scalar_prefetch = 0 : i64, scratch_operands = 0 : i64, tpu.core_type = #tpu.core_type<tc>, window_params = [{transform_indices = @transform_0, window_bounds = array<i64: 8, 128>}, {transform_indices = @transform_1, window_bounds = array<i64: 128, 128>}, {pipeline_mode = #tpu.pipeline_mode<synchronous>, transform_indices = @transform_2, window_bounds = array<i64: 128, 128>}, {pipeline_mode = #tpu.pipeline_mode<synchronous>, transform_indices = @transform_3, window_bounds = array<i64: 1, 128>}, {transform_indices = @transform_4, window_bounds = array<i64: 8, 128>}, {transform_indices = @transform_5, window_bounds = array<i64: 8, 128>}]} {
    %c0 = arith.constant 0 : index
    %c0_0 = arith.constant 0 : index
    %0 = vector.load %arg2[%c0, %c0_0] : memref<8x128xf32, #tpu.memory_space<vmem>>, vector<8x128xf32>
    %c0_1 = arith.constant 0 : index
    %c0_2 = arith.constant 0 : index
    %1 = vector.load %arg3[%c0_1, %c0_2] : memref<128x128xf32, #tpu.memory_space<vmem>>, vector<128x128xf32>
    %c0_3 = arith.constant 0 : index
    %c0_4 = arith.constant 0 : index
    %2 = vector.load %arg4[%c0_3, %c0_4] : memref<128x128xf32, #tpu.memory_space<vmem>>, vector<128x128xf32>
    %c0_5 = arith.constant 0 : index
    %c0_6 = arith.constant 0 : index
    %3 = vector.load %arg5[%c0_5, %c0_6] : memref<1x128xf32, #tpu.memory_space<vmem>>, vector<1x128xf32>
    %cst = arith.constant dense<0.000000e+00> : vector<8x128xf32>
    %4 = tpu.matmul %0, %2, %cst {dimension_numbers = #tpu.dot_dimension_numbers<[1], [0], [0], [1], [0, 0, 1, 1], [], []>} : vector<8x128xf32>, vector<128x128xf32>, vector<8x128xf32> -> vector<8x128xf32>
    %5 = vector.broadcast %3 : vector<1x128xf32> to vector<8x128xf32>
    %6 = arith.addf %4, %5 : vector<8x128xf32>
    %cst_7 = arith.constant dense<0.000000e+00> : vector<128x128xf32>
    %7 = tpu.matmul %1, %2, %cst_7 {dimension_numbers = #tpu.dot_dimension_numbers<[1], [0], [0], [1], [0, 0, 1, 1], [], []>} : vector<128x128xf32>, vector<128x128xf32>, vector<128x128xf32> -> vector<128x128xf32>
    %8 = vector.broadcast %3 : vector<1x128xf32> to vector<128x128xf32>
    %9 = arith.addf %7, %8 : vector<128x128xf32>
    %10 = arith.mulf %6, %6 : vector<8x128xf32>
    %cst_8 = arith.constant dense<0.000000e+00> : vector<8xf32>
    %11 = vector.multi_reduction <add>, %10, %cst_8 [1] : vector<8x128xf32> to vector<8xf32>
    %12 = vector.shape_cast %11 : vector<8xf32> to vector<8x1xf32>
    %13 = arith.mulf %9, %9 : vector<128x128xf32>
    %cst_9 = arith.constant dense<0.000000e+00> : vector<128xf32>
    %14 = vector.multi_reduction <add>, %13, %cst_9 [1] : vector<128x128xf32> to vector<128xf32>
    %15 = vector.shape_cast %14 : vector<128xf32> to vector<128x1xf32>
    %16 = tpu.transpose %9, [1, 0] : vector<128x128xf32> -> vector<128x128xf32>
    %cst_10 = arith.constant dense<0.000000e+00> : vector<8x128xf32>
    %17 = tpu.matmul %6, %16, %cst_10 {dimension_numbers = #tpu.dot_dimension_numbers<[1], [0], [0], [1], [0, 0, 1, 1], [], []>} : vector<8x128xf32>, vector<128x128xf32>, vector<8x128xf32> -> vector<8x128xf32>
    %18 = tpu.transpose %15, [1, 0] : vector<128x1xf32> -> vector<1x128xf32>
    %19 = vector.broadcast %12 : vector<8x1xf32> to vector<8x128xf32>
    %20 = vector.broadcast %18 : vector<1x128xf32> to vector<8x128xf32>
    %21 = arith.addf %19, %20 : vector<8x128xf32>
    %cst_11 = arith.constant 2.000000e+00 : f32
    %22 = vector.broadcast %cst_11 : f32 to vector<8x128xf32>
    %23 = arith.mulf %22, %17 : vector<8x128xf32>
    %24 = arith.subf %21, %23 : vector<8x128xf32>
    %cst_12 = arith.constant 1.000000e-30 : f32
    %25 = vector.broadcast %cst_12 : f32 to vector<8x128xf32>
    %26 = arith.maximumf %24, %25 : vector<8x128xf32>
    %27 = arith.mulf %0, %0 : vector<8x128xf32>
    %cst_13 = arith.constant dense<0.000000e+00> : vector<8xf32>
    %28 = vector.multi_reduction <add>, %27, %cst_13 [1] : vector<8x128xf32> to vector<8xf32>
    %29 = vector.shape_cast %28 : vector<8xf32> to vector<8x1xf32>
    %30 = arith.mulf %1, %1 : vector<128x128xf32>
    %cst_14 = arith.constant dense<0.000000e+00> : vector<128xf32>
    %31 = vector.multi_reduction <add>, %30, %cst_14 [1] : vector<128x128xf32> to vector<128xf32>
    %32 = vector.shape_cast %31 : vector<128xf32> to vector<128x1xf32>
    %33 = tpu.transpose %1, [1, 0] : vector<128x128xf32> -> vector<128x128xf32>
    %cst_15 = arith.constant dense<0.000000e+00> : vector<8x128xf32>
    %34 = tpu.matmul %0, %33, %cst_15 {dimension_numbers = #tpu.dot_dimension_numbers<[1], [0], [0], [1], [0, 0, 1, 1], [], []>} : vector<8x128xf32>, vector<128x128xf32>, vector<8x128xf32> -> vector<8x128xf32>
    %35 = tpu.transpose %32, [1, 0] : vector<128x1xf32> -> vector<1x128xf32>
    %36 = vector.broadcast %29 : vector<8x1xf32> to vector<8x128xf32>
    %37 = vector.broadcast %35 : vector<1x128xf32> to vector<8x128xf32>
    %38 = arith.addf %36, %37 : vector<8x128xf32>
    %cst_16 = arith.constant 2.000000e+00 : f32
    %39 = vector.broadcast %cst_16 : f32 to vector<8x128xf32>
    %40 = arith.mulf %39, %34 : vector<8x128xf32>
    %41 = arith.subf %38, %40 : vector<8x128xf32>
    %cst_17 = arith.constant 1.000000e-30 : f32
    %42 = vector.broadcast %cst_17 : f32 to vector<8x128xf32>
    %43 = arith.maximumf %41, %42 : vector<8x128xf32>
    %c8_i32 = arith.constant 8 : i32
    %44 = arith.muli %arg0, %c8_i32 : i32
    %45 = tpu.iota {dimensions = array<i32: 0>} : vector<8x128xi32>
    %46 = vector.broadcast %44 : i32 to vector<8x128xi32>
    %47 = arith.addi %46, %45 : vector<8x128xi32>
    %c128_i32 = arith.constant 128 : i32
    %48 = arith.muli %arg1, %c128_i32 : i32
    %49 = tpu.iota {dimensions = array<i32: 1>} : vector<8x128xi32>
    %50 = vector.broadcast %48 : i32 to vector<8x128xi32>
    %51 = arith.addi %50, %49 : vector<8x128xi32>
    %c8_i32_18 = arith.constant 8 : i32
    %52 = vector.broadcast %c8_i32_18 : i32 to vector<8x128xi32>
    %53 = arith.cmpi slt, %47, %52 : vector<8x128xi32>
    %c8_i32_19 = arith.constant 8 : i32
    %54 = vector.broadcast %c8_i32_19 : i32 to vector<8x128xi32>
    %55 = arith.cmpi slt, %51, %54 : vector<8x128xi32>
    %56 = arith.andi %53, %55 : vector<8x128xi1>
    %cst_20 = arith.constant 1.000000e+30 : f32
    %57 = vector.broadcast %cst_20 : f32 to vector<8x128xf32>
    %58 = arith.select %56, %26, %57 : vector<8x128xi1>, vector<8x128xf32>
    %cst_21 = arith.constant 1.000000e+30 : f32
    %59 = vector.broadcast %cst_21 : f32 to vector<8x128xf32>
    %60 = arith.select %56, %43, %59 : vector<8x128xi1>, vector<8x128xf32>
    %c0_22 = arith.constant 0 : index
    %c0_23 = arith.constant 0 : index
    %61 = vector.load %arg6[%c0_22, %c0_23] : memref<8x128xf32, #tpu.memory_space<vmem>>, vector<8x128xf32>
    tpu.vector_store %arg6[%c0_22, %c0_23], %58 {strides = array<i32>} : memref<8x128xf32, #tpu.memory_space<vmem>>, vector<8x128xf32>,
    %c0_24 = arith.constant 0 : index
    %c0_25 = arith.constant 0 : index
    %62 = vector.load %arg7[%c0_24, %c0_25] : memref<8x128xf32, #tpu.memory_space<vmem>>, vector<8x128xf32>
    tpu.vector_store %arg7[%c0_24, %c0_25], %60 {strides = array<i32>} : memref<8x128xf32, #tpu.memory_space<vmem>>, vector<8x128xf32>,
    return
  }
  func.func @transform_0(%arg0: i32, %arg1: i32) -> (i32, i32) {
    %c0_i32 = arith.constant 0 : i32
    %c0_i32_0 = arith.constant 0 : i32
    return %arg0, %c0_i32 : i32, i32
  }
  func.func @transform_1(%arg0: i32, %arg1: i32) -> (i32, i32) {
    %c0_i32 = arith.constant 0 : i32
    %c0_i32_0 = arith.constant 0 : i32
    return %arg1, %c0_i32 : i32, i32
  }
  func.func @transform_2(%arg0: i32, %arg1: i32) -> (i32, i32) {
    %c0_i32 = arith.constant 0 : i32
    %c0_i32_0 = arith.constant 0 : i32
    %c0_i32_1 = arith.constant 0 : i32
    return %c0_i32, %c0_i32_0 : i32, i32
  }
  func.func @transform_3(%arg0: i32, %arg1: i32) -> (i32, i32) {
    %c0_i32 = arith.constant 0 : i32
    %c0_i32_0 = arith.constant 0 : i32
    %c0_i32_1 = arith.constant 0 : i32
    return %c0_i32, %c0_i32_0 : i32, i32
  }
  func.func @transform_4(%arg0: i32, %arg1: i32) -> (i32, i32) {
    %c0_i32 = arith.constant 0 : i32
    return %arg0, %arg1 : i32, i32
  }
  func.func @transform_5(%arg0: i32, %arg1: i32) -> (i32, i32) {
    %c0_i32 = arith.constant 0 : i32
    return %arg0, %arg1 : i32, i32
  }
}

</mosaic_0001>

<bundles_post_ra>
// kernel: deep_kernel_forward.3
= control target key start
LH: loop header
LB: loop body
LE: loop exit
PB: predicated region body
PF: predicated region fallthrough
CT: control target
= control target key end

     0   :  { %8 = vsyncpa [#allocation3], 0  ;;  %s108_s0 = inlined_call_operand.vmem [shape: f32[3], index: 0, kind: input, shape index: {}]   ;;  %s109_s1 = inlined_call_operand.vmem [shape: f32[8,128], index: 1, kind: input, shape index: {}, may-alias: {1,3}]   ;;  %s110_s2 = inlined_call_operand.vmem [shape: f32[8,128], index: 2, kind: input, shape index: {}]   ;;  %s111_s3 = inlined_call_operand.vmem [shape: f32[8,128], index: 3, kind: output, shape index: {}, may-alias: {1,3}]  }
   0x1   :  { %s15_s14 = sshll.u32 %s108_s0, 4  ;;  %s16_s14 = int_to_ptr.vmem [resolvable:$true] %s15_s14 }
   0x2   :  { %s61_s15 = scalar_lea.vmem %s16_s14, 16  ;;  %p66_p1 = scmp.lt.s32.totalorder %s16_s14, %s16_s14 }
   0x3   :  { %p62_p0 = scmp.ne.s32.totalorder %s16_s14, %s61_s15  ;;  %p67_p2 = scmp.lt.s32.totalorder %s61_s15, %s61_s15 }
   0x5   :  { %p68_p3 = por %p67_p2, %p66_p1 }
   0x7   :  { %p69_p4 = pnand %p68_p3, %p62_p0 }
   0x9   :  { %72 = shalt.err (!%p69_p4)
}
   0xa   :  { %s75_s16 = smov [#allocation2]  }
   0xb   :  { %18 = dma.vmem_to_smem %s16_s14, 16, %s75_s16, [#allocation3]  }
   0xc   :  { %73 = dma.done.wait [#allocation3], 16  }
   0xd   :  { %74 = vsyncadd [#allocation3], 4294967280 }
   0xe   :  { %26 = sfence }
   0xf   :  { %s27_s17 = sld [smem:[#allocation2]]  ;;  %s54_s18 = sld [smem:[#allocation2 + $0x1]]  ;;  %v31_v0 = vld [vmem:[%s109_s1] sm:$0xff] }
  0x10   :  { %v37_v1 = vld [vmem:[%s110_s2] sm:$0xff]  ;;  %s55_s24 = sld [smem:[#allocation2 + $0x2]] }
  0x15   :  { %s30_s19 = ssub.f32 0.0, %s27_s17 }
  0x16   :  { %s36_s0 = ssub.f32 0.0, %s54_s18  ;;  %v45_v9 = vstv %s55_s24 }
  0x17   :  { %v32_v2 = vstv %s30_s19  ;;  %s42_s25 = ssub.f32 1.0, %s55_s24 }
  0x18   :  { %v33_v3 = vmul.f32 %v32_v2, %v31_v0  ;;  %v38_v4 = vstv %s36_s0 }
  0x19   :  { %v39_v5 = vmul.f32 %v38_v4, %v37_v1  ;;  %v43_v8 = vstv %s42_s25 }
  0x1a   :  { %v34_v6 = vmul.f32 1.442695, %v33_v3 }
  0x1b   :  { %v40_v7 = vmul.f32 1.442695, %v39_v5 }
  0x1c   :  { %57 = vpow2.f32 %v34_v6 }
  0x1d   :  { %59 = vpow2.f32 %v40_v7 }
  0x26   :  { %v58_v10 = vpop.eup %57 }
  0x27   :  { %v60_v11 = vpop.eup %59  ;;  %v44_v12 = vmul.f32 %v58_v10, %v43_v8 }
  0x28   :  { %v46_v13 = vmul.f32 %v60_v11, %v45_v9 }
  0x2a   :  { %v47_v14 = vadd.f32 %v46_v13, %v44_v12 }
  0x2c   :  { %48 = vst [vmem:[%s111_s3] sm:$0xff] %v47_v14 }
  0x2d   :  { %53 = vsyncpa [#allocation3], 1 }

// kernel: deep_kernel_forward.2
= control target key start
LH: loop header
LB: loop body
LE: loop exit
PB: predicated region body
PF: predicated region fallthrough
CT: control target
= control target key end

     0   :  { %v973_v0 = vmov 0.0|0.0   ;;  %vm974_vm0 = vmmov 0   ;;  %v975_v4 = vmov 0.0   ;;  %s1207_s2 = inlined_call_operand.vmem [shape: f32[128,128], index: 2, kind: input, shape index: {}]   ;;  %s1208_s1 = inlined_call_operand.vmem [shape: f32[128,128], index: 1, kind: input, shape index: {}]   ;;  %s1209_s0 = inlined_call_operand.vmem [shape: f32[8,128], index: 0, kind: input, shape index: {}]   ;;  %s1210_s3 = inlined_call_operand.vmem [shape: f32[1,128], index: 3, kind: input, shape index: {}]   ;;  %s1211_s5 = inlined_call_operand.vmem [shape: f32[8,128], index: 5, kind: output, shape index: {1}]   ;;  %s1212_s4 = inlined_call_operand.vmem [shape: f32[8,128], index: 4, kind: output, shape index: {0}]  }
   0x1   :  { %866 = vmatprep.subr.bf16.mxu0 %v973_v0  ;;  %v36_v1 = vld [vmem:[%s1207_s2] sm:$0xff]  ;;  %v37_v2 = vld [vmem:[%s1207_s2 + $0x8] sm:$0xff]  ;;  %v38_v3 = vld [vmem:[%s1207_s2 + $0x10] sm:$0xff]  ;;  %737 = vmatprep.mubr.msk.f32.mxu0 %vm974_vm0, %v975_v4 }
   0x2   :  { %v867_v5 = vpack.c.bf16 %v37_v2, %v36_v1  ;;  %v39_v6 = vld [vmem:[%s1207_s2 + $0x18] sm:$0xff]  ;;  %v40_v8 = vld [vmem:[%s1207_s2 + $0x20] sm:$0xff]  ;;  %v41_v9 = vld [vmem:[%s1207_s2 + $0x28] sm:$0xff] }
   0x3   :  { %v870_v7 = vpack.c.bf16 %v39_v6, %v38_v3  ;;  %v873_v10 = vpack.c.bf16 %v41_v9, %v40_v8  ;;  %v1031_v11 = vld [vmem:[%s1208_s1] sm:$0xff]  ;;  %v42_v12 = vld [vmem:[%s1207_s2 + $0x30] sm:$0xff]  ;;  %v43_v13 = vld [vmem:[%s1207_s2 + $0x38] sm:$0xff] }
   0x4   :  { %868 = vmatpush3.bf16.msra.mxu0 %v867_v5  ;;  %891 = vmatprep.subr.bf16.mxu1 %v867_v5  ;;  %v438_v14 = vmul.f32 %v1031_v11, %v1031_v11  ;;  %v1046_v15 = vld [vmem:[%s1208_s1 + $0x8] sm:$0xff]  ;;  %v876_v16 = vpack.c.bf16 %v43_v13, %v42_v12  ;;  %v44_v18 = vld [vmem:[%s1207_s2 + $0x40] sm:$0xff]  ;;  %v1060_v20 = vld [vmem:[%s1208_s1 + $0x10] sm:$0xff] }
   0x5   :  { %893 = vmatpush3.bf16.msra.mxu1 %v867_v5  ;;  %869 = vmatprep.subr.bf16.mxu0 %v973_v0  ;;  %v439_v17 = vmul.f32 %v1046_v15, %v1046_v15  ;;  %v45_v19 = vld [vmem:[%s1207_s2 + $0x48] sm:$0xff]  ;;  %v440_v22 = vmul.f32 %v1060_v20, %v1060_v20  ;;  %v46_v23 = vld [vmem:[%s1207_s2 + $0x50] sm:$0xff]  ;;  %v47_v24 = vld [vmem:[%s1207_s2 + $0x58] sm:$0xff]  ;;  %v947_v44 = vpack.c.bf16 %v1046_v15, %v1031_v11 }
   0x6   :  { %895 = vmatprep.subr.bf16.mxu1 %v870_v7  ;;  %772 = vmatprep.mubr.f32.mxu1 %v1031_v11  ;;  %v879_v21 = vpack.c.bf16 %v45_v19, %v44_v18  ;;  %v1074_v25 = vld [vmem:[%s1208_s1 + $0x18] sm:$0xff]  ;;  %v882_v26 = vpack.c.bf16 %v47_v24, %v46_v23  ;;  %v48_v28 = vld [vmem:[%s1207_s2 + $0x60] sm:$0xff]  ;;  %v49_v29 = vld [vmem:[%s1207_s2 + $0x68] sm:$0xff] }
   0x7   :  { %454 = vadd.xlane.f32.xlu0 %v438_v14  ;;  %v441_v27 = vmul.f32 %v1074_v25, %v1074_v25  ;;  %v1088_v30 = vld [vmem:[%s1208_s1 + $0x20] sm:$0xff]  ;;  %v885_v31 = vpack.c.bf16 %v49_v29, %v48_v28  ;;  %v50_v33 = vld [vmem:[%s1207_s2 + $0x70] sm:$0xff]  ;;  %v51_v34 = vld [vmem:[%s1207_s2 + $0x78] sm:$0xff]  ;;  %v950_v49 = vpack.c.bf16 %v1074_v25, %v1060_v20 }
   0x8   :  { %871 = vmatpush3.bf16.msra.mxu0 %v870_v7  ;;  %v442_v32 = vmul.f32 %v1088_v30, %v1088_v30  ;;  %v25_v35 = vld [vmem:[%s1208_s1 + $0x28] sm:$0xff]  ;;  %v888_v36 = vpack.c.bf16 %v51_v34, %v50_v33  ;;  %v26_v38 = vld [vmem:[%s1208_s1 + $0x30] sm:$0xff]  ;;  %v1109_v40 = vld [vmem:[%s1209_s0] sm:$0xff] }
   0x9   :  { %897 = vmatpush3.bf16.msra.mxu1 %v870_v7  ;;  %872 = vmatprep.subr.bf16.mxu0 %v973_v0  ;;  %v443_v37 = vmul.f32 %v25_v35, %v25_v35  ;;  %v444_v39 = vmul.f32 %v26_v38, %v26_v38  ;;  %v27_v41 = vld [vmem:[%s1208_s1 + $0x38] sm:$0xff]  ;;  %v28_v43 = vld [vmem:[%s1208_s1 + $0x40] sm:$0xff]  ;;  %v29_v46 = vld [vmem:[%s1208_s1 + $0x48] sm:$0xff]  ;;  %v953_v54 = vpack.c.bf16 %v25_v35, %v1088_v30 }
   0xa   :  { %899 = vmatprep.subr.bf16.mxu1 %v873_v10  ;;  %v445_v42 = vmul.f32 %v27_v41, %v27_v41  ;;  %v446_v45 = vmul.f32 %v28_v43, %v28_v43  ;;  %v447_v47 = vmul.f32 %v29_v46, %v29_v46  ;;  %v30_v48 = vld [vmem:[%s1208_s1 + $0x50] sm:$0xff]  ;;  %v31_v51 = vld [vmem:[%s1208_s1 + $0x58] sm:$0xff]  ;;  %v32_v53 = vld [vmem:[%s1208_s1 + $0x60] sm:$0xff]  ;;  %v956_v60 = vpack.c.bf16 %v27_v41, %v26_v38 }
   0xb   :  { %456 = vadd.xlane.f32.xlu0 %v439_v17  ;;  %v448_v50 = vmul.f32 %v30_v48, %v30_v48  ;;  %v449_v52 = vmul.f32 %v31_v51, %v31_v51  ;;  %v450_v55 = vmul.f32 %v32_v53, %v32_v53  ;;  %v33_v56 = vld [vmem:[%s1208_s1 + $0x68] sm:$0xff]  ;;  %v34_v57 = vld [vmem:[%s1208_s1 + $0x70] sm:$0xff]  ;;  %v35_v59 = vld [vmem:[%s1208_s1 + $0x78] sm:$0xff]  ;;  %v959_v63 = vpack.c.bf16 %v29_v46, %v28_v43 }
   0xc   :  { %874 = vmatpush3.bf16.msra.mxu0 %v873_v10  ;;  %v451_v58 = vmul.f32 %v33_v56, %v33_v56  ;;  %v452_v61 = vmul.f32 %v34_v57, %v34_v57  ;;  %v453_v62 = vmul.f32 %v35_v59, %v35_v59  ;;  %v962_v1 = vpack.c.bf16 %v31_v51, %v30_v48  ;;  %v1167_v5 = vld [vmem:[%s1210_s3] ss:$0 sm:$0xff] }
   0xd   :  { %901 = vmatpush3.bf16.msra.mxu1 %v873_v10  ;;  %875 = vmatprep.subr.bf16.mxu0 %v973_v0  ;;  %v965_v2 = vpack.c.bf16 %v33_v56, %v32_v53  ;;  %v968_v3 = vpack.c.bf16 %v35_v59, %v34_v57 }
   0xe   :  { %903 = vmatprep.subr.bf16.mxu1 %v876_v16 }
   0xf   :  { %458 = vadd.xlane.f32.xlu0 %v440_v22 }
  0x10   :  { %877 = vmatpush3.bf16.msra.mxu0 %v876_v16 }
  0x11   :  { %905 = vmatpush3.bf16.msra.mxu1 %v876_v16  ;;  %878 = vmatprep.subr.bf16.mxu0 %v973_v0 }
  0x12   :  { %907 = vmatprep.subr.bf16.mxu1 %v879_v21 }
  0x13   :  { %460 = vadd.xlane.f32.xlu0 %v441_v27 }
  0x14   :  { %880 = vmatpush3.bf16.msra.mxu0 %v879_v21 }
  0x15   :  { %909 = vmatpush3.bf16.msra.mxu1 %v879_v21  ;;  %881 = vmatprep.subr.bf16.mxu0 %v973_v0 }
  0x16   :  { %911 = vmatprep.subr.bf16.mxu1 %v882_v26 }
  0x17   :  { %462 = vadd.xlane.f32.xlu0 %v442_v32 }
  0x18   :  { %883 = vmatpush3.bf16.msra.mxu0 %v882_v26 }
  0x19   :  { %913 = vmatpush3.bf16.msra.mxu1 %v882_v26  ;;  %884 = vmatprep.subr.bf16.mxu0 %v973_v0 }
  0x1a   :  { %915 = vmatprep.subr.bf16.mxu1 %v885_v31 }
  0x1b   :  { %464 = vadd.xlane.f32.xlu0 %v443_v37 }
  0x1c   :  { %886 = vmatpush3.bf16.msra.mxu0 %v885_v31 }
  0x1d   :  { %917 = vmatpush3.bf16.msra.mxu1 %v885_v31  ;;  %887 = vmatprep.subr.bf16.mxu0 %v973_v0 }
  0x1e   :  { %919 = vmatprep.subr.bf16.mxu1 %v888_v36 }
  0x1f   :  { %466 = vadd.xlane.f32.xlu0 %v444_v39 }
  0x20   :  { %889 = vmatpush3.bf16.msra.mxu0 %v888_v36 }
  0x21   :  { %921 = vmatpush3.bf16.msra.mxu1 %v888_v36  ;;  %922 = vmatprep.subr.bf16.mxu0 %v973_v0 }
  0x22   :  { %946 = vmatprep.subr.bf16.mxu1 %v973_v0 }
  0x23   :  { %738 = vmatmul.mubr.f32.vlgmr.msra.gmra.mrb[0].mxu0 %v1109_v40  ;;  %468 = vadd.xlane.f32.xlu0 %v445_v42 }
  0x24   :  { %773 = vmatmul.mubr.f32.vlgmr.msra.gmra.mrb[0].mxu1 %v1046_v15  ;;  %828 = vmatprep.mubr.msk.f32.mxu0 %vm974_vm0, %v975_v4 }
  0x25   :  { %775 = vmatprep.mubr.f32.mxu1 %v1060_v20 }
  0x27   :  { %470 = vadd.xlane.f32.xlu0 %v446_v45 }
  0x28   :  { %776 = vmatmul.mubr.f32.gmra.mrb[2].mxu1 %v1074_v25 }
  0x29   :  { %778 = vmatprep.mubr.f32.mxu1 %v1088_v30 }
  0x2a   :  { %948 = vmatpush3.bf16.xpose.msra.mxu1 %v947_v44 }
  0x2b   :  { %949 = vmatprep.subr.bf16.mxu1 %v973_v0  ;;  %472 = vadd.xlane.f32.xlu0 %v447_v47 }
  0x2c   :  { %779 = vmatmul.mubr.f32.gmra.mrb[4].mxu1 %v25_v35 }
  0x2d   :  { %781 = vmatprep.mubr.f32.mxu1 %v26_v38 }
  0x2f   :  { %474 = vadd.xlane.f32.xlu0 %v448_v50 }
  0x30   :  { %782 = vmatmul.mubr.f32.gmra.mrb[6].mxu1 %v27_v41 }
  0x31   :  { %784 = vmatprep.mubr.f32.mxu1 %v28_v43 }
  0x32   :  { %951 = vmatpush3.bf16.xpose.msra.mxu1 %v950_v49 }
  0x33   :  { %952 = vmatprep.subr.bf16.mxu1 %v973_v0  ;;  %476 = vadd.xlane.f32.xlu0 %v449_v52 }
  0x34   :  { %785 = vmatmul.mubr.f32.gmra.mrb[8].mxu1 %v29_v46 }
  0x35   :  { %787 = vmatprep.mubr.f32.mxu1 %v30_v48 }
  0x37   :  { %478 = vadd.xlane.f32.xlu0 %v450_v55 }
  0x38   :  { %788 = vmatmul.mubr.f32.gmra.mrb[10].mxu1 %v31_v51 }
  0x39   :  { %790 = vmatprep.mubr.f32.mxu1 %v32_v53 }
  0x3a   :  { %954 = vmatpush3.bf16.xpose.msra.mxu1 %v953_v54 }
  0x3b   :  { %955 = vmatprep.subr.bf16.mxu1 %v973_v0  ;;  %480 = vadd.xlane.f32.xlu0 %v451_v58 }
  0x3c   :  { %791 = vmatmul.mubr.f32.gmra.mrb[12].mxu1 %v33_v56 }
  0x3d   :  { %793 = vmatprep.mubr.f32.mxu1 %v34_v57 }
  0x3f   :  { %482 = vadd.xlane.f32.xlu0 %v452_v61 }
  0x40   :  { %794 = vmatmul.mubr.f32.gmra.mrb[14].mxu1 %v35_v59 }
  0x41   :  { %863 = vmatprep.mubr.msk.f32.mxu1 %vm974_vm0, %v975_v4  ;;  %v435_v4 = vmul.f32 %v1109_v40, %v1109_v40 }
  0x42   :  { %957 = vmatpush3.bf16.xpose.msra.mxu1 %v956_v60 }
  0x43   :  { %958 = vmatprep.subr.bf16.mxu1 %v973_v0  ;;  %484 = vadd.xlane.f32.xlu0 %v453_v62 }
  0x47   :  { %436 = vadd.xlane.f32.xlu0 %v435_v4 }
  0x4a   :  { %960 = vmatpush3.bf16.xpose.msra.mxu1 %v959_v63 }
  0x4b   :  { %961 = vmatprep.subr.bf16.mxu1 %v973_v0 }
  0x52   :  { %963 = vmatpush3.bf16.xpose.msra.mxu1 %v962_v1 }
  0x53   :  { %964 = vmatprep.subr.bf16.mxu1 %v973_v0 }
  0x5a   :  { %966 = vmatpush3.bf16.xpose.msra.mxu1 %v965_v2 }
  0x5b   :  { %967 = vmatprep.subr.bf16.mxu1 %v973_v0 }
  0x62   :  { %969 = vmatpush3.bf16.xpose.msra.mxu1 %v968_v3 }
  0x69   :  { %864 = vmatmul.mubr.f32.vlgmr.msra.gmra.mrb[16].mxu1 %v1109_v40 }
  0x94   :  { %v455_v3 = vpop.xlane.xlu0 %454 }
  0x98   :  { %v457_v4 = vpop.xlane.xlu0 %456 }
  0xf6   :  { %v125_v6 = vpop.f32.mrb[0].mxu0 }
  0xf7   :  { %v1170_v7 = vadd.f32 %v1167_v5, %v125_v6  ;;  %v774_v8 = vpop.f32.mrb[0].mxu1  ;;  %v739_v9 = vpop.f32.mrb[1].mxu0 }
  0xf8   :  { %v201_v10 = vadd.f32 %v774_v8, %v1167_v5  ;;  %v195_v11 = vpop.f32.mrb[1].mxu1 }
  0xf9   :  { %v196_v12 = vadd.f32 %v1167_v5, %v195_v11  ;;  %v274_v13 = vmul.f32 %v1170_v7, %v1170_v7 }
  0xfa   :  { %v278_v14 = vmul.f32 %v201_v10, %v201_v10 }
  0xfb   :  { %v923_v15 = vpack.c.bf16 %v201_v10, %v196_v12  ;;  %275 = vadd.xlane.f32.xlu0 %v274_v13  ;;  %v777_v16 = vpop.f32.mrb[2].mxu1  ;;  %v277_v20 = vmul.f32 %v196_v12, %v196_v12 }
  0xfc   :  { %295 = vadd.xlane.f32.xlu1 %v278_v14  ;;  %v211_v17 = vadd.f32 %v777_v16, %v1167_v5  ;;  %v205_v18 = vpop.f32.mrb[3].mxu1 }
  0xfd   :  { %924 = vmatpush3.bf16.xpose.msra.mxu0 %v923_v15  ;;  %v206_v19 = vadd.f32 %v1167_v5, %v205_v18 }
  0xfe   :  { %925 = vmatprep.subr.bf16.mxu0 %v973_v0  ;;  %v280_v23 = vmul.f32 %v211_v17, %v211_v17 }
  0xff   :  { %v926_v21 = vpack.c.bf16 %v211_v17, %v206_v19  ;;  %293 = vadd.xlane.f32.xlu0 %v277_v20  ;;  %v780_v22 = vpop.f32.mrb[4].mxu1  ;;  %v279_v24 = vmul.f32 %v206_v19, %v206_v19 }
 0x100   :  { %v221_v25 = vadd.f32 %v780_v22, %v1167_v5  ;;  %v215_v26 = vpop.f32.mrb[5].mxu1 }
 0x101   :  { %297 = vadd.xlane.f32.xlu1 %v279_v24  ;;  %v216_v27 = vadd.f32 %v1167_v5, %v215_v26 }
 0x102   :  { %v282_v30 = vmul.f32 %v221_v25, %v221_v25 }
 0x103   :  { %299 = vadd.xlane.f32.xlu0 %v280_v23  ;;  %v929_v28 = vpack.c.bf16 %v221_v25, %v216_v27  ;;  %v783_v29 = vpop.f32.mrb[6].mxu1  ;;  %v281_v31 = vmul.f32 %v216_v27, %v216_v27 }
 0x104   :  { %v231_v32 = vadd.f32 %v783_v29, %v1167_v5  ;;  %v225_v33 = vpop.f32.mrb[7].mxu1 }
 0x105   :  { %927 = vmatpush3.bf16.xpose.msra.mxu0 %v926_v21  ;;  %v226_v34 = vadd.f32 %v1167_v5, %v225_v33  ;;  %301 = vadd.xlane.f32.xlu1 %v281_v31 }
 0x106   :  { %928 = vmatprep.subr.bf16.mxu0 %v973_v0  ;;  %v284_v37 = vmul.f32 %v231_v32, %v231_v32 }
 0x107   :  { %303 = vadd.xlane.f32.xlu0 %v282_v30  ;;  %v932_v35 = vpack.c.bf16 %v231_v32, %v226_v34  ;;  %v786_v36 = vpop.f32.mrb[8].mxu1  ;;  %v283_v38 = vmul.f32 %v226_v34, %v226_v34 }
 0x108   :  { %v241_v39 = vadd.f32 %v786_v36, %v1167_v5  ;;  %v235_v40 = vpop.f32.mrb[9].mxu1 }
 0x109   :  { %v236_v41 = vadd.f32 %v1167_v5, %v235_v40  ;;  %305 = vadd.xlane.f32.xlu1 %v283_v38 }
 0x10a   :  { %v286_v44 = vmul.f32 %v241_v39, %v241_v39 }
 0x10b   :  { %307 = vadd.xlane.f32.xlu0 %v284_v37  ;;  %v935_v42 = vpack.c.bf16 %v241_v39, %v236_v41  ;;  %v789_v43 = vpop.f32.mrb[10].mxu1  ;;  %v285_v45 = vmul.f32 %v236_v41, %v236_v41 }
 0x10c   :  { %v251_v46 = vadd.f32 %v789_v43, %v1167_v5  ;;  %v245_v47 = vpop.f32.mrb[11].mxu1 }
 0x10d   :  { %930 = vmatpush3.bf16.xpose.msra.mxu0 %v929_v28  ;;  %v246_v48 = vadd.f32 %v1167_v5, %v245_v47  ;;  %309 = vadd.xlane.f32.xlu1 %v285_v45 }
 0x10e   :  { %931 = vmatprep.subr.bf16.mxu0 %v973_v0  ;;  %v288_v51 = vmul.f32 %v251_v46, %v251_v46 }
 0x10f   :  { %311 = vadd.xlane.f32.xlu0 %v286_v44  ;;  %v938_v49 = vpack.c.bf16 %v251_v46, %v246_v48  ;;  %v792_v50 = vpop.f32.mrb[12].mxu1  ;;  %v287_v52 = vmul.f32 %v246_v48, %v246_v48 }
 0x110   :  { %v261_v53 = vadd.f32 %v792_v50, %v1167_v5  ;;  %v255_v54 = vpop.f32.mrb[13].mxu1 }
 0x111   :  { %v256_v55 = vadd.f32 %v1167_v5, %v255_v54  ;;  %313 = vadd.xlane.f32.xlu1 %v287_v52 }
 0x112   :  { %v290_v58 = vmul.f32 %v261_v53, %v261_v53 }
 0x113   :  { %315 = vadd.xlane.f32.xlu0 %v288_v51  ;;  %v941_v56 = vpack.c.bf16 %v261_v53, %v256_v55  ;;  %v795_v57 = vpop.f32.mrb[14].mxu1  ;;  %v289_v59 = vmul.f32 %v256_v55, %v256_v55 }
 0x114   :  { %v271_v60 = vadd.f32 %v795_v57, %v1167_v5  ;;  %v265_v61 = vpop.f32.mrb[15].mxu1 }
 0x115   :  { %933 = vmatpush3.bf16.xpose.msra.mxu0 %v932_v35  ;;  %317 = vadd.xlane.f32.xlu1 %v289_v59  ;;  %v266_v62 = vadd.f32 %v1167_v5, %v265_v61  ;;  %v459_v5 = vpop.xlane.xlu0 %458  ;;  %v427_v35 = vlaneseq }
 0x116   :  { %934 = vmatprep.subr.bf16.mxu0 %v973_v0  ;;  %v292_v63 = vmul.f32 %v271_v60, %v271_v60 }
 0x117   :  { %319 = vadd.xlane.f32.xlu0 %v290_v58  ;;  %v944_v1 = vpack.c.bf16 %v271_v60, %v266_v62  ;;  %v291_v2 = vmul.f32 %v266_v62, %v266_v62  ;;  %v428_v37 = vshrl.u32 %v427_v35, 7  ;;  %v603_v44 = vand.u32 127, %v427_v35 }
 0x119   :  { %321 = vadd.xlane.f32.xlu1 %v291_v2  ;;  %v461_v6 = vpop.xlane.xlu0 %460  ;;  %v429_v40 = vsub.s32 0, %v428_v37  ;;  %vm607_vm1 = vcmp.lt.s32.totalorder %v603_v44, 8 }
 0x11b   :  { %323 = vadd.xlane.f32.xlu0 %v292_v63 }
 0x11d   :  { %936 = vmatpush3.bf16.xpose.msra.mxu0 %v935_v42  ;;  %v463_v8 = vpop.xlane.xlu0 %462 }
 0x11e   :  { %937 = vmatprep.subr.bf16.mxu0 %v973_v0 }
 0x121   :  { %v465_v9 = vpop.xlane.xlu0 %464 }
 0x125   :  { %939 = vmatpush3.bf16.xpose.msra.mxu0 %v938_v49  ;;  %v467_v10 = vpop.xlane.xlu0 %466 }
 0x126   :  { %940 = vmatprep.subr.bf16.mxu0 %v973_v0 }
 0x129   :  { %v469_v13 = vpop.xlane.xlu0 %468 }
 0x12d   :  { %942 = vmatpush3.bf16.xpose.msra.mxu0 %v941_v56  ;;  %v471_v14 = vpop.xlane.xlu0 %470 }
 0x12e   :  { %943 = vmatprep.subr.bf16.mxu0 %v973_v0 }
 0x131   :  { %v473_v15 = vpop.xlane.xlu0 %472 }
 0x135   :  { %945 = vmatpush3.bf16.xpose.msra.mxu0 %v944_v1  ;;  %v475_v0 = vpop.xlane.xlu0 %474 }
 0x139   :  { %v477_v16 = vpop.xlane.xlu0 %476 }
 0x13c   :  { %829 = vmatmul.mubr.f32.vlgmr.msra.gmra.mrb[2].mxu0 %v1170_v7  ;;  %v1198_v11 = vpop.f32.mrb[16].mxu1 }
 0x13d   :  { %v865_v12 = vpop.f32.mrb[17].mxu1  ;;  %v479_v7 = vpop.xlane.xlu0 %478  ;;  %v593_v43 = vmul.f32 2.0, %v1198_v11 }
 0x141   :  { %v481_v17 = vpop.xlane.xlu0 %480 }
 0x145   :  { %v483_v18 = vpop.xlane.xlu0 %482 }
 0x148   :  { %556 = vxpose.xlu0.b32.start [1/16] (narrow) %v455_v3, 8 }
 0x149   :  { %v485_v19 = vpop.xlane.xlu0 %484 }
 0x14c   :  { %557 = vxpose.xlu0.b32.cont [2/16] (narrow) %v457_v4, 8 }
 0x14d   :  { %v437_v20 = vpop.xlane.xlu0 %436 }
 0x150   :  { %558 = vxpose.xlu0.b32.cont [3/16] (narrow) %v459_v5, 8 }
 0x154   :  { %559 = vxpose.xlu0.b32.cont [4/16] (narrow) %v461_v6, 8 }
 0x158   :  { %560 = vxpose.xlu0.b32.cont [5/16] (narrow) %v463_v8, 8 }
 0x15c   :  { %561 = vxpose.xlu0.b32.cont [6/16] (narrow) %v465_v9, 8 }
 0x160   :  { %562 = vxpose.xlu0.b32.cont [7/16] (narrow) %v467_v10, 8 }
 0x164   :  { %563 = vxpose.xlu0.b32.cont [8/16] (narrow) %v469_v13, 8 }
 0x168   :  { %564 = vxpose.xlu0.b32.cont [9/16] (narrow) %v471_v14, 8 }
 0x16c   :  { %565 = vxpose.xlu0.b32.cont [10/16] (narrow) %v473_v15, 8 }
 0x170   :  { %566 = vxpose.xlu0.b32.cont [11/16] (narrow) %v475_v0, 8 }
 0x174   :  { %567 = vxpose.xlu0.b32.cont [12/16] (narrow) %v477_v16, 8 }
 0x178   :  { %568 = vxpose.xlu0.b32.cont [13/16] (narrow) %v479_v7, 8 }
 0x17c   :  { %569 = vxpose.xlu0.b32.cont [14/16] (narrow) %v481_v17, 8 }
 0x180   :  { %570 = vxpose.xlu0.b32.cont [15/16] (narrow) %v483_v18, 8 }
 0x184   :  { %571 = vxpose.xlu0.b32.end [16/16] (narrow) %v485_v19, 8 }
 0x188   :  { %v276_v21 = vpop.xlane.xlu0 %275 }
 0x189   :  { %v296_v23 = vpop.xlane.xlu1 %295 }
 0x18c   :  { %v294_v22 = vpop.xlane.xlu0 %293 }
 0x18d   :  { %395 = vxpose.xlu1.b32.start [1/16] (narrow) %v294_v22, 8 }
 0x18e   :  { %v298_v24 = vpop.xlane.xlu1 %297 }
 0x190   :  { %v300_v25 = vpop.xlane.xlu0 %299 }
 0x191   :  { %396 = vxpose.xlu1.b32.cont [2/16] (narrow) %v296_v23, 8 }
 0x192   :  { %v302_v26 = vpop.xlane.xlu1 %301 }
 0x194   :  { %v304_v27 = vpop.xlane.xlu0 %303 }
 0x195   :  { %397 = vxpose.xlu1.b32.cont [3/16] (narrow) %v298_v24, 8 }
 0x196   :  { %v306_v28 = vpop.xlane.xlu1 %305 }
 0x198   :  { %v308_v29 = vpop.xlane.xlu0 %307 }
 0x199   :  { %398 = vxpose.xlu1.b32.cont [4/16] (narrow) %v300_v25, 8 }
 0x19a   :  { %v310_v30 = vpop.xlane.xlu1 %309 }
 0x19c   :  { %v312_v31 = vpop.xlane.xlu0 %311 }
 0x19d   :  { %399 = vxpose.xlu1.b32.cont [5/16] (narrow) %v302_v26, 8 }
 0x19e   :  { %v314_v32 = vpop.xlane.xlu1 %313 }
 0x1a0   :  { %v316_v33 = vpop.xlane.xlu0 %315 }
 0x1a1   :  { %400 = vxpose.xlu1.b32.cont [6/16] (narrow) %v304_v27, 8 }
 0x1a2   :  { %v318_v34 = vpop.xlane.xlu1 %317 }
 0x1a4   :  { %v320_v36 = vpop.xlane.xlu0 %319 }
 0x1a5   :  { %401 = vxpose.xlu1.b32.cont [7/16] (narrow) %v306_v28, 8 }
 0x1a6   :  { %v322_v38 = vpop.xlane.xlu1 %321 }
 0x1a8   :  { %v324_v39 = vpop.xlane.xlu0 %323 }
 0x1a9   :  { %402 = vxpose.xlu1.b32.cont [8/16] (narrow) %v308_v29, 8 }
 0x1ad   :  { %403 = vxpose.xlu1.b32.cont [9/16] (narrow) %v310_v30, 8 }
 0x1b1   :  { %404 = vxpose.xlu1.b32.cont [10/16] (narrow) %v312_v31, 8 }
 0x1b5   :  { %405 = vxpose.xlu1.b32.cont [11/16] (narrow) %v314_v32, 8 }
 0x1b9   :  { %406 = vxpose.xlu1.b32.cont [12/16] (narrow) %v316_v33, 8 }
 0x1bd   :  { %407 = vxpose.xlu1.b32.cont [13/16] (narrow) %v318_v34, 8 }
 0x1c1   :  { %408 = vxpose.xlu1.b32.cont [14/16] (narrow) %v320_v36, 8 }
 0x1c5   :  { %409 = vxpose.xlu1.b32.cont [15/16] (narrow) %v322_v38, 8 }
 0x1c8   :  { %v572_v41 = vpop.trf.xlu0 }
 0x1c9   :  { %v591_v42 = vrot.slane %v572_v41, %v429_v40  ;;  %410 = vxpose.xlu1.b32.end [16/16] (narrow) %v324_v39, 8 }
 0x1cb   :  { %v592_v45 = vadd.f32 %v591_v42, %v437_v20 }
 0x1cd   :  { %v594_v46 = vsub.f32 %v592_v45, %v593_v43 }
 0x1cf   :  { %v595_v47 = vmax.f32 %v594_v46, 1e-30 }
 0x1d1   :  { %v610_v48 = vsel %vm607_vm1, %v595_v47, 1e+30 }
 0x1d2   :  { %612 = vst [vmem:[%s1211_s5] sm:$0xff] %v610_v48 }
 0x20d   :  { %v411_v49 = vpop.trf.xlu1 }
 0x20e   :  { %v430_v50 = vrot.slane %v411_v49, %v429_v40 }
 0x20f   :  { %v391_v51 = vpop.f32.mrb[2].mxu0 }
 0x210   :  { %v431_v52 = vadd.f32 %v430_v50, %v276_v21  ;;  %v432_v53 = vmul.f32 2.0, %v391_v51  ;;  %v830_v54 = vpop.f32.mrb[3].mxu0 }
 0x212   :  { %v433_v55 = vsub.f32 %v431_v52, %v432_v53 }
 0x214   :  { %v434_v56 = vmax.f32 %v433_v55, 1e-30 }
 0x216   :  { %v609_v57 = vsel %vm607_vm1, %v434_v56, 1e+30 }
 0x217   :  { %611 = vst [vmem:[%s1212_s4] sm:$0xff] %v609_v57 }

</bundles_post_ra>
